<compile_context>
chip_gen: v6e
topology: v6e:2x2x1
jax: 0.10.0
libtpu: 0.0.40
codegen_flags: <defaults>
</compile_context>

<pallas_src>
import jax
import jax.numpy as jnp
from jax import lax
from jax.experimental import pallas as pl
from jax.experimental.pallas import tpu as pltpu

H = 128            # LSTM hidden size ("dimension")
E = 300            # embedding dim
NUM_CLASSES = 4    # args.type == 'act'


def _round_up(x, m):
    return ((x + m - 1) // m) * m


# ---------------------------------------------------------------------------
# Pass 1: hoisted input projection  (T*B, E_pad) @ (E_pad, 4H) + bias
# ---------------------------------------------------------------------------
def _pregates_kernel(x_ref, w_ref, b_ref, o_ref):
    acc = jnp.dot(x_ref[...], w_ref[...], preferred_element_type=jnp.float32)
    o_ref[...] = (acc + b_ref[...]).astype(o_ref.dtype)


def _pregates(x_flat, w, b, out_dtype):
    M, K = x_flat.shape
    N = w.shape[1]
    tm = next(t for t in (1024, 512, 256, 128, 64, 32, 16, 8) if M % t == 0)
    return pl.pallas_call(
        _pregates_kernel,
        out_shape=jax.ShapeDtypeStruct((M, N), out_dtype),
        grid=(M // tm,),
        in_specs=[pl.BlockSpec((tm, K), lambda i: (i, 0)),
                  pl.BlockSpec((K, N), lambda i: (0, 0)),
                  pl.BlockSpec((1, N), lambda i: (0, 0))],
        out_specs=pl.BlockSpec((tm, N), lambda i: (i, 0)),
        compiler_params=pltpu.CompilerParams(
            dimension_semantics=("parallel",)),
    )(x_flat, w, b)


# ---------------------------------------------------------------------------
# Pass 2: fused bidirectional recurrence + FC + log-softmax
# ---------------------------------------------------------------------------
def _lstm_cell(h, c, gates, keep):
    # PyTorch gate order: i, f, g, o
    i = jax.nn.sigmoid(gates[:, 0 * H:1 * H])
    f = jax.nn.sigmoid(gates[:, 1 * H:2 * H])
    g = jnp.tanh(gates[:, 2 * H:3 * H])
    o = jax.nn.sigmoid(gates[:, 3 * H:4 * H])
    c_new = f * c + i * g
    h_new = o * jnp.tanh(c_new)
    return jnp.where(keep, h_new, h), jnp.where(keep, c_new, c)


def _bilstm_recurrence_kernel(lens_ref, gf_ref, gb_ref, whhf_ref, whhb_ref,
                              wfc_ref, bfc_ref, out_ref, hf, cf, hb, cb):
    chunk = pl.program_id(1)
    n_chunks = pl.num_programs(1)
    tc = gf_ref.shape[0]
    t_total = n_chunks * tc

    @pl.when(chunk == 0)
    def _init():
        hf[...] = jnp.zeros_like(hf)
        cf[...] = jnp.zeros_like(cf)
        hb[...] = jnp.zeros_like(hb)
        cb[...] = jnp.zeros_like(cb)

    lens = lens_ref[...]            # (Bt, 1) int32
    whh_f = whhf_ref[...]           # hoisted out of the time loop
    whh_b = whhb_ref[...]

    def step(s, carry):
        h_f, c_f, h_b, c_b = carry
        t_f = chunk * tc + s                      # global fwd timestep
        t_b = t_total - 1 - t_f                   # global bwd timestep
        # two independent directions -> both MXU dots issued back-to-back
        gates_f = (gf_ref[s].astype(jnp.float32)
                   + jnp.dot(h_f.astype(whh_f.dtype), whh_f,
                             preferred_element_type=jnp.float32))
        gates_b = (gb_ref[tc - 1 - s].astype(jnp.float32)
                   + jnp.dot(h_b.astype(whh_b.dtype), whh_b,
                             preferred_element_type=jnp.float32))
        h_f, c_f = _lstm_cell(h_f, c_f, gates_f, t_f < lens)
        h_b, c_b = _lstm_cell(h_b, c_b, gates_b, t_b < lens)
        return h_f, c_f, h_b, c_b

    # h/c are register-resident loop carries; scratch is touched once per chunk.
    h_f, c_f, h_b, c_b = lax.fori_loop(
        0, tc, step, (hf[...], cf[...], hb[...], cb[...]), unroll=2)

    hf[...] = h_f
    cf[...] = c_f
    hb[...] = h_b
    cb[...] = c_b

    @pl.when(chunk == n_chunks - 1)
    def _finalize():
        # torch.cat((out_forward, out_reverse), 1)
        feats = jnp.concatenate([h_f, h_b], axis=1)            # (Bt, 2H)
        # Dropout(p=0.5) is identity in eval mode.
        # TODO(synk): train-mode stochastic dropout mask not implemented.
        logits = (jnp.dot(feats.astype(wfc_ref.dtype), wfc_ref[...],
                          preferred_element_type=jnp.float32)
                  + bfc_ref[...])
        m = jnp.max(logits, axis=1, keepdims=True)
        z = logits - m
        lse = jnp.log(jnp.sum(jnp.exp(z), axis=1, keepdims=True))
        out_ref[...] = (z - lse).astype(out_ref.dtype)         # LogSoftmax(dim=1)


# ---------------------------------------------------------------------------
# Wrapper
# ---------------------------------------------------------------------------
def lstm_forward(text, text_len, params, *, compute_dtype=jnp.bfloat16):
    (emb_table, wih_f, whh_f, b_f, wih_b, whh_b, b_b, wfc, bfc) = params
    B, T = text.shape
    C = wfc.shape[1]

    # ---- padding / tiling choices (MXU- and lane-aligned) ----
    B_pad = _round_up(B, 8)
    B_tile = next(t for t in (128, 64, 32, 16, 8) if B_pad % t == 0)
    TC = T if T <= 32 else 32                    # timesteps per grid chunk
    T_pad = _round_up(T, TC)
    n_chunks = T_pad // TC
    E_pad = _round_up(E, 128)                    # 300 -> 384

    # ---- glue: embedding gather, layout, padding (plain JAX) ----
    # TODO(synk): embedding gather kept in XLA (no clean dense Pallas equivalent).
    x = emb_table[text].astype(jnp.float32)                       # (B, T, E)
    x = jnp.pad(x, ((0, B_pad - B), (0, T_pad - T), (0, E_pad - E)))
    x_tm = jnp.transpose(x, (1, 0, 2))                            # (T_pad, B_pad, E_pad)
    x_flat = x_tm.reshape(T_pad * B_pad, E_pad).astype(compute_dtype)

    lens = jnp.pad(text_len.astype(jnp.int32), (0, B_pad - B)).reshape(B_pad, 1)

    wih_f_p = jnp.pad(wih_f, ((0, E_pad - E), (0, 0))).astype(compute_dtype)
    wih_b_p = jnp.pad(wih_b, ((0, E_pad - E), (0, 0))).astype(compute_dtype)

    # ---- hoisted input projection: one big MXU matmul per direction ----
    gf = _pregates(x_flat, wih_f_p, b_f, compute_dtype).reshape(T_pad, B_pad, 4 * H)
    gb = _pregates(x_flat, wih_b_p, b_b, compute_dtype).reshape(T_pad, B_pad, 4 * H)

    whh_f_c = whh_f.astype(compute_dtype)
    whh_b_c = whh_b.astype(compute_dtype)
    wfc_c = wfc.astype(compute_dtype)
    bfc_f = bfc.astype(jnp.float32)

    # ---- explicit scoped-VMEM budget (streamed chunks + weights + states) ----
    isz = jnp.dtype(compute_dtype).itemsize
    vmem_bytes = (
        2 * 2 * TC * B_tile * 4 * H * isz       # gf + gb chunks, double buffered
        + 2 * 2 * H * 4 * H * isz               # whh_f / whh_b
        + 2 * (2 * H + 1 + B_tile) * 128 * 4    # fc weights / biases / lens (lane-padded)
        + 2 * B_tile * 128 * 4                  # output block
        + 4 * B_tile * H * 4                    # h/c scratch
        + (8 << 20))                            # headroom
    vmem_bytes = int(min(vmem_bytes, 100 << 20))

    out = pl.pallas_call(
        _bilstm_recurrence_kernel,
        out_shape=jax.ShapeDtypeStruct((B_pad, C), jnp.float32),
        grid=(B_pad // B_tile, n_chunks),
        in_specs=[
            pl.BlockSpec((B_tile, 1), lambda b, c: (b, 0)),                # lens
            pl.BlockSpec((TC, B_tile, 4 * H), lambda b, c: (c, b, 0)),     # fwd pre-gates
            pl.BlockSpec((TC, B_tile, 4 * H),
                         lambda b, c: (n_chunks - 1 - c, b, 0)),           # bwd pre-gates
            pl.BlockSpec((H, 4 * H), lambda b, c: (0, 0)),                 # whh_f
            pl.BlockSpec((H, 4 * H), lambda b, c: (0, 0)),                 # whh_b
            pl.BlockSpec((2 * H, C), lambda b, c: (0, 0)),                 # wfc
            pl.BlockSpec((1, C), lambda b, c: (0, 0)),                     # bfc
        ],
        out_specs=pl.BlockSpec((B_tile, C), lambda b, c: (b, 0)),
        scratch_shapes=[pltpu.VMEM((B_tile, H), jnp.float32)] * 4,
        compiler_params=pltpu.CompilerParams(
            dimension_semantics=("parallel", "arbitrary"),
            vmem_limit_bytes=vmem_bytes),
    )(lens, gf, gb, whh_f_c, whh_b_c, wfc_c, bfc_f)

    return out[:B]


# ---------------------------------------------------------------------------
# Params / pure-JAX reference / demo
# ---------------------------------------------------------------------------
def init_params(key, vocab_size):
    ks = jax.random.split(key, 11)
    k = 1.0 / jnp.sqrt(H)
    u = lambda kk, shape: jax.random.uniform(kk, shape, jnp.float32, -k, k)
    emb_table = jax.random.normal(ks[0], (vocab_size, E), jnp.float32)
    # PyTorch stores weight_ih (4H, E) / weight_hh (4H, H); we keep transposes.
    wih_f = u(ks[1], (E, 4 * H))
    whh_f = u(ks[2], (H, 4 * H))
    b_f = u(ks[3], (1, 4 * H)) + u(ks[4], (1, 4 * H))           # b_ih + b_hh
    wih_b = u(ks[5], (E, 4 * H))
    whh_b = u(ks[6], (H, 4 * H))
    b_b = u(ks[7], (1, 4 * H)) + u(ks[8], (1, 4 * H))
    kf = 1.0 / jnp.sqrt(2 * H)
    wfc = jax.random.uniform(ks[9], (2 * H, NUM_CLASSES), jnp.float32, -kf, kf)
    bfc = jax.random.uniform(ks[10], (1, NUM_CLASSES), jnp.float32, -kf, kf)
    return (emb_table, wih_f, whh_f, b_f, wih_b, whh_b, b_b, wfc, bfc)


def reference(text, text_len, params):
    """Pure-JAX f32 reference mirroring the PyTorch forward (eval mode)."""
    (emb_table, wih_f, whh_f, b_f, wih_b, whh_b, b_b, wfc, bfc) = params
    B, T = text.shape
    x = emb_table[text].astype(jnp.float32)
    mask = (jnp.arange(T)[None, :] < text_len[:, None]).astype(jnp.float32)

    def cell(h, c, x_t, m_t, wih, whh, b):
        gates = x_t @ wih + h @ whh + b
        i = jax.nn.sigmoid(gates[:, :H])
        f = jax.nn.sigmoid(gates[:, H:2 * H])
        g = jnp.tanh(gates[:, 2 * H:3 * H])
        o = jax.nn.sigmoid(gates[:, 3 * H:])
        c_new = f * c + i * g
        h_new = o * jnp.tanh(c_new)
        m = m_t[:, None] > 0
        return jnp.where(m, h_new, h), jnp.where(m, c_new, c)

    hf = jnp.zeros((B, H), jnp.float32)
    cf = jnp.zeros((B, H), jnp.float32)
    for t in range(T):
        hf, cf = cell(hf, cf, x[:, t], mask[:, t], wih_f, whh_f, b_f)
    hb = jnp.zeros((B, H), jnp.float32)
    cb = jnp.zeros((B, H), jnp.float32)
    for t in range(T - 1, -1, -1):
        hb, cb = cell(hb, cb, x[:, t], mask[:, t], wih_b, whh_b, b_b)
    feats = jnp.concatenate([hf, hb], axis=1)
    logits = feats @ wfc + bfc
    return jax.nn.log_softmax(logits, axis=1)


if __name__ == "__main__":
    VOCAB = 50
    B, T = 2, 8
    key = jax.random.PRNGKey(0)
    k_par, k_txt = jax.random.split(key)
    params = init_params(k_par, VOCAB)
    text = jax.random.randint(k_txt, (B, T), 0, VOCAB, dtype=jnp.int32)
    text_len = jnp.array([8, 5], dtype=jnp.int32)   # variable lengths (packed-seq semantics)

    ref = reference(text, text_len, params)

    # f32 path: tight correctness check
    out_f32 = jax.block_until_ready(
        lstm_forward(text, text_len, params, compute_dtype=jnp.float32))
    assert out_f32.shape == (B, NUM_CLASSES)
    err_f32 = float(jnp.max(jnp.abs(out_f32 - ref)))
    assert err_f32 < 5e-3, f"f32 kernel mismatch vs reference: {err_f32}"

    # bf16 path (default, for v6e/v7x MXU rate): loose check
    out_bf16 = jax.block_until_ready(
        lstm_forward(text, text_len, params, compute_dtype=jnp.bfloat16))
    assert out_bf16.shape == (B, NUM_CLASSES)
    err_bf16 = float(jnp.max(jnp.abs(out_bf16 - ref)))
    assert err_bf16 < 1e-1, f"bf16 kernel mismatch vs reference: {err_bf16}"

    print("KERNEL_OK")
</pallas_src>

<mosaic_0001>
module attributes {stable_mosaic.version = 11 : i64} {
  func.func @_pregates_kernel(%arg0: i32, %arg1: memref<64x384xf32, #tpu.memory_space<vmem>>, %arg2: memref<384x512xf32, #tpu.memory_space<vmem>>, %arg3: memref<1x512xf32, #tpu.memory_space<vmem>>, %arg4: memref<64x512xf32, #tpu.memory_space<vmem>>) attributes {dimension_semantics = [#tpu.dimension_semantics<parallel>], iteration_bounds = array<i64: 1>, scalar_prefetch = 0 : i64, scratch_operands = 0 : i64, tpu.core_type = #tpu.core_type<tc>, window_params = [{transform_indices = @transform_0, window_bounds = array<i64: 64, 384>}, {pipeline_mode = #tpu.pipeline_mode<synchronous>, transform_indices = @transform_1, window_bounds = array<i64: 384, 512>}, {pipeline_mode = #tpu.pipeline_mode<synchronous>, transform_indices = @transform_2, window_bounds = array<i64: 1, 512>}, {transform_indices = @transform_3, window_bounds = array<i64: 64, 512>}]} {
    %c0 = arith.constant 0 : index
    %c0_0 = arith.constant 0 : index
    %0 = vector.load %arg1[%c0, %c0_0] : memref<64x384xf32, #tpu.memory_space<vmem>>, vector<64x384xf32>
    %c0_1 = arith.constant 0 : index
    %c0_2 = arith.constant 0 : index
    %1 = vector.load %arg2[%c0_1, %c0_2] : memref<384x512xf32, #tpu.memory_space<vmem>>, vector<384x512xf32>
    %cst = arith.constant dense<0.000000e+00> : vector<64x512xf32>
    %2 = tpu.matmul %0, %1, %cst {dimension_numbers = #tpu.dot_dimension_numbers<[1], [0], [0], [1], [0, 0, 1, 1], [], []>} : vector<64x384xf32>, vector<384x512xf32>, vector<64x512xf32> -> vector<64x512xf32>
    %c0_3 = arith.constant 0 : index
    %c0_4 = arith.constant 0 : index
    %3 = vector.load %arg3[%c0_3, %c0_4] : memref<1x512xf32, #tpu.memory_space<vmem>>, vector<1x512xf32>
    %4 = vector.broadcast %3 : vector<1x512xf32> to vector<64x512xf32>
    %5 = arith.addf %2, %4 : vector<64x512xf32>
    %c0_5 = arith.constant 0 : index
    %c0_6 = arith.constant 0 : index
    %6 = vector.load %arg4[%c0_5, %c0_6] : memref<64x512xf32, #tpu.memory_space<vmem>>, vector<64x512xf32>
    tpu.vector_store %arg4[%c0_5, %c0_6], %5 {strides = array<i32>} : memref<64x512xf32, #tpu.memory_space<vmem>>, vector<64x512xf32>,
    return
  }
  func.func @transform_0(%arg0: i32) -> (i32, i32) {
    %c0_i32 = arith.constant 0 : i32
    %c0_i32_0 = arith.constant 0 : i32
    return %arg0, %c0_i32 : i32, i32
  }
  func.func @transform_1(%arg0: i32) -> (i32, i32) {
    %c0_i32 = arith.constant 0 : i32
    %c0_i32_0 = arith.constant 0 : i32
    %c0_i32_1 = arith.constant 0 : i32
    return %c0_i32, %c0_i32_0 : i32, i32
  }
  func.func @transform_2(%arg0: i32) -> (i32, i32) {
    %c0_i32 = arith.constant 0 : i32
    %c0_i32_0 = arith.constant 0 : i32
    %c0_i32_1 = arith.constant 0 : i32
    return %c0_i32, %c0_i32_0 : i32, i32
  }
  func.func @transform_3(%arg0: i32) -> (i32, i32) {
    %c0_i32 = arith.constant 0 : i32
    %c0_i32_0 = arith.constant 0 : i32
    return %arg0, %c0_i32 : i32, i32
  }
}

</mosaic_0001>

<bundles_post_ra>
// kernel: tpu_custom_call.1
= control target key start
LH: loop header
LB: loop body
LE: loop exit
PB: predicated region body
PF: predicated region fallthrough
CT: control target
= control target key end

     0   :  { %8 = vsyncpa [#allocation3], 0  ;;  %s1092_s0 = inlined_call_operand.hbm [shape: f32[64,384], index: 0, kind: input, shape index: {}]   ;;  %s1093_s1 = inlined_call_operand.hbm [shape: f32[384,512], index: 1, kind: input, shape index: {}]   ;;  %s1094_s2 = inlined_call_operand.hbm [shape: f32[1,512], index: 2, kind: input, shape index: {}]   ;;  %s1095_s3 = inlined_call_operand.hbm [shape: f32[64,512], index: 3, kind: output, shape index: {}]  }
   0x1   :  { %9 = vsyncpa [#allocation6], 0 }
   0x2   :  { %10 = vsyncpa [#allocation4], 0  ;;  %s889_s12 = smov [#allocation5]  }
   0x3   :  { %s28_s13 = sshll.u32 %s889_s12, 4  ;;  %s29_s13 = int_to_ptr.vmem [resolvable:$true] %s28_s13 }
   0x4   :  { %s811_s14 = scalar_lea.vmem %s29_s13, 24576  ;;  %p816_p1 = scmp.lt.s32.totalorder %s29_s13, %s29_s13 }
   0x5   :  { %p812_p0 = scmp.ne.s32.totalorder %s29_s13, %s811_s14  ;;  %p817_p2 = scmp.lt.s32.totalorder %s811_s14, %s811_s14 }
   0x7   :  { %p818_p3 = por %p817_p2, %p816_p1 }
   0x9   :  { %p819_p4 = pnand %p818_p3, %p812_p0 }
   0xb   :  { %822 = shalt.err (!%p819_p4)
}
   0xc   :  { %s890_s15 = smov 512   ;;  %s891_s16 = smov 32  }
   0xd   :  { %34 = dma.hbm_to_vmem [thread:$0]  %s1093_s1, 24576, %s29_s13, [#allocation6], %s890_s15, %s890_s15, %s891_s16  }
   0xe   :  { %s892_s19 = smov [#allocation2]  }
   0xf   :  { %s16_s20 = sshll.u32 %s892_s19, 4  ;;  %s17_s20 = int_to_ptr.vmem [resolvable:$true] %s16_s20 }
  0x10   :  { %s831_s21 = scalar_lea.vmem %s17_s20, 3072  ;;  %p836_p6 = scmp.lt.s32.totalorder %s17_s20, %s17_s20 }
  0x11   :  { %p832_p5 = scmp.ne.s32.totalorder %s17_s20, %s831_s21  ;;  %p837_p7 = scmp.lt.s32.totalorder %s831_s21, %s831_s21 }
  0x13   :  { %p838_p8 = por %p837_p7, %p836_p6 }
  0x15   :  { %p839_p9 = pnand %p838_p8, %p832_p5 }
  0x17   :  { %842 = shalt.err (!%p839_p9)
}
  0x18   :  { %s893_s22 = smov 384   ;;  %s894_s23 = smov 24  }
  0x19   :  { %22 = dma.hbm_to_vmem [thread:$0]  %s1092_s0, 3072, %s17_s20, [#allocation3], %s893_s22, %s893_s22, %s894_s23  }
  0x1a   :  { %s895_s26 = smov [#allocation7]  }
  0x1b   :  { %s41_s27 = sshll.u32 %s895_s26, 4  ;;  %s42_s27 = int_to_ptr.vmem [resolvable:$true] %s41_s27 }
  0x1c   :  { %s851_s1 = scalar_lea.vmem %s42_s27, 64  ;;  %p856_p11 = scmp.lt.s32.totalorder %s42_s27, %s42_s27 }
  0x1d   :  { %p852_p10 = scmp.ne.s32.totalorder %s42_s27, %s851_s1  ;;  %p857_p12 = scmp.lt.s32.totalorder %s851_s1, %s851_s1 }
  0x1f   :  { %p858_p13 = por %p857_p12, %p856_p11 }
  0x21   :  { %p859_p0 = pnand %p858_p13, %p852_p10 }
  0x23   :  { %862 = shalt.err (!%p859_p0)
}
  0x24   :  { %44 = dma.hbm_to_vmem [thread:$0]  %s1094_s2, 64, %s42_s27, [#allocation6]  }
  0x25   :  { %883 = dma.done.wait [#allocation3], 3072  }
  0x26   :  { %884 = vsyncadd [#allocation3], 4294964224 }
  0x27   :  { %885 = dma.done.wait [#allocation6], 24640  }
  0x28   :  { %886 = vsyncadd [#allocation6], 4294942656  ;;  %v896_v0 = vmov 0.0   ;;  %v139_v1 = vld [vmem:[#allocation5 + $0x1e8] sm:$0xff]  ;;  %v138_v3 = vld [vmem:[#allocation5 + $0x1e0] sm:$0xff]  ;;  %s897_s0 = smov [#allocation8]  }
  0x29   :  { %469 = vmatprep.mubr.f32.mxu1 %v896_v0  ;;  %v267_v2 = vld [vmem:[#allocation5 + $0x5e8] sm:$0xff]  ;;  %292 = vmatprep.subr.mxu0 %v139_v1  ;;  %v266_v4 = vld [vmem:[#allocation5 + $0x5e0] sm:$0xff]  ;;  %s781_s2 = sshll.u32 %s897_s0, 4  ;;  %s782_s2 = int_to_ptr.vmem [resolvable:$true] %s781_s2 }
  0x2a   :  { %405 = vmatprep.subr.mxu1 %v267_v2  ;;  %v135_v5 = vld [vmem:[#allocation5 + $0x1c8] sm:$0xff]  ;;  %293 = vmatpush1.msra.mxu0 %v138_v3  ;;  %v134_v7 = vld [vmem:[#allocation5 + $0x1c0] sm:$0xff]  ;;  %v931_v3 = vld [vmem:[#allocation2 + $0x10] sm:$0xff]  ;;  %s863_s30 = scalar_lea.vmem %s782_s2, 4096  ;;  %p868_p2 = scmp.lt.s32.totalorder %s782_s2, %s782_s2 }
  0x2b   :  { %v263_v6 = vld [vmem:[#allocation5 + $0x5c8] sm:$0xff]  ;;  %406 = vmatpush1.msra.mxu1 %v266_v4  ;;  %v262_v8 = vld [vmem:[#allocation5 + $0x5c0] sm:$0xff]  ;;  %294 = vmatprep.subr.mxu0 %v135_v5  ;;  %v141_v4 = vld [vmem:[#allocation5 + $0x1f8] sm:$0xff]  ;;  %p864_p1 = scmp.ne.s32.totalorder %s782_s2, %s863_s30  ;;  %p869_p3 = scmp.lt.s32.totalorder %s863_s30, %s863_s30 }
  0x2c   :  { %v131_v9 = vld [vmem:[#allocation5 + $0x1a8] sm:$0xff]  ;;  %407 = vmatprep.subr.mxu1 %v263_v6  ;;  %v130_v11 = vld [vmem:[#allocation5 + $0x1a0] sm:$0xff]  ;;  %295 = vmatpush1.msra.mxu0 %v134_v7  ;;  %v140_v6 = vld [vmem:[#allocation5 + $0x1f0] sm:$0xff] }
  0x2d   :  { %v259_v10 = vld [vmem:[#allocation5 + $0x5a8] sm:$0xff]  ;;  %v258_v12 = vld [vmem:[#allocation5 + $0x5a0] sm:$0xff]  ;;  %408 = vmatpush1.msra.mxu1 %v262_v8  ;;  %296 = vmatprep.subr.mxu0 %v131_v9  ;;  %v137_v8 = vld [vmem:[#allocation5 + $0x1d8] sm:$0xff]  ;;  %p870_p4 = por %p869_p3, %p868_p2 }
  0x2e   :  { %v127_v13 = vld [vmem:[#allocation5 + $0x188] sm:$0xff]  ;;  %409 = vmatprep.subr.mxu1 %v259_v10  ;;  %v126_v15 = vld [vmem:[#allocation5 + $0x180] sm:$0xff]  ;;  %297 = vmatpush1.msra.mxu0 %v130_v11  ;;  %v136_v10 = vld [vmem:[#allocation5 + $0x1d0] sm:$0xff] }
  0x2f   :  { %v255_v14 = vld [vmem:[#allocation5 + $0x588] sm:$0xff]  ;;  %v254_v16 = vld [vmem:[#allocation5 + $0x580] sm:$0xff]  ;;  %410 = vmatpush1.msra.mxu1 %v258_v12  ;;  %298 = vmatprep.subr.mxu0 %v127_v13  ;;  %v133_v12 = vld [vmem:[#allocation5 + $0x1b8] sm:$0xff]  ;;  %p871_p5 = pnand %p870_p4, %p864_p1 }
  0x30   :  { %v123_v17 = vld [vmem:[#allocation5 + $0x168] sm:$0xff]  ;;  %411 = vmatprep.subr.mxu1 %v255_v14  ;;  %v122_v19 = vld [vmem:[#allocation5 + $0x160] sm:$0xff]  ;;  %299 = vmatpush1.msra.mxu0 %v126_v15  ;;  %v132_v14 = vld [vmem:[#allocation5 + $0x1b0] sm:$0xff] }
  0x31   :  { %v251_v18 = vld [vmem:[#allocation5 + $0x568] sm:$0xff]  ;;  %v250_v20 = vld [vmem:[#allocation5 + $0x560] sm:$0xff]  ;;  %412 = vmatpush1.msra.mxu1 %v254_v16  ;;  %300 = vmatprep.subr.mxu0 %v123_v17  ;;  %v129_v16 = vld [vmem:[#allocation5 + $0x198] sm:$0xff] }
  0x32   :  { %v119_v21 = vld [vmem:[#allocation5 + $0x148] sm:$0xff]  ;;  %413 = vmatprep.subr.mxu1 %v251_v18  ;;  %v118_v23 = vld [vmem:[#allocation5 + $0x140] sm:$0xff]  ;;  %301 = vmatpush1.msra.mxu0 %v122_v19  ;;  %v128_v18 = vld [vmem:[#allocation5 + $0x190] sm:$0xff] }
  0x33   :  { %v247_v22 = vld [vmem:[#allocation5 + $0x548] sm:$0xff]  ;;  %v246_v24 = vld [vmem:[#allocation5 + $0x540] sm:$0xff]  ;;  %414 = vmatpush1.msra.mxu1 %v250_v20  ;;  %302 = vmatprep.subr.mxu0 %v119_v21  ;;  %v125_v20 = vld [vmem:[#allocation5 + $0x178] sm:$0xff] }
  0x34   :  { %v115_v25 = vld [vmem:[#allocation5 + $0x128] sm:$0xff]  ;;  %415 = vmatprep.subr.mxu1 %v247_v22  ;;  %v114_v27 = vld [vmem:[#allocation5 + $0x120] sm:$0xff]  ;;  %303 = vmatpush1.msra.mxu0 %v118_v23  ;;  %v124_v22 = vld [vmem:[#allocation5 + $0x170] sm:$0xff] }
  0x35   :  { %v243_v26 = vld [vmem:[#allocation5 + $0x528] sm:$0xff]  ;;  %v242_v28 = vld [vmem:[#allocation5 + $0x520] sm:$0xff]  ;;  %416 = vmatpush1.msra.mxu1 %v246_v24  ;;  %304 = vmatprep.subr.mxu0 %v115_v25  ;;  %v121_v24 = vld [vmem:[#allocation5 + $0x158] sm:$0xff] }
  0x36   :  { %v111_v29 = vld [vmem:[#allocation5 + $0x108] sm:$0xff]  ;;  %417 = vmatprep.subr.mxu1 %v243_v26  ;;  %v110_v31 = vld [vmem:[#allocation5 + $0x100] sm:$0xff]  ;;  %305 = vmatpush1.msra.mxu0 %v114_v27  ;;  %v120_v26 = vld [vmem:[#allocation5 + $0x150] sm:$0xff] }
  0x37   :  { %v239_v30 = vld [vmem:[#allocation5 + $0x508] sm:$0xff]  ;;  %v238_v32 = vld [vmem:[#allocation5 + $0x500] sm:$0xff]  ;;  %418 = vmatpush1.msra.mxu1 %v242_v28  ;;  %306 = vmatprep.subr.mxu0 %v111_v29  ;;  %v117_v28 = vld [vmem:[#allocation5 + $0x138] sm:$0xff] }
  0x38   :  { %v107_v33 = vld [vmem:[#allocation5 + $0xe8] sm:$0xff]  ;;  %419 = vmatprep.subr.mxu1 %v239_v30  ;;  %v106_v35 = vld [vmem:[#allocation5 + $0xe0] sm:$0xff]  ;;  %307 = vmatpush1.msra.mxu0 %v110_v31  ;;  %v116_v30 = vld [vmem:[#allocation5 + $0x130] sm:$0xff] }
  0x39   :  { %v235_v34 = vld [vmem:[#allocation5 + $0x4e8] sm:$0xff]  ;;  %v234_v36 = vld [vmem:[#allocation5 + $0x4e0] sm:$0xff]  ;;  %420 = vmatpush1.msra.mxu1 %v238_v32  ;;  %308 = vmatprep.subr.mxu0 %v107_v33  ;;  %v113_v32 = vld [vmem:[#allocation5 + $0x118] sm:$0xff] }
  0x3a   :  { %v103_v37 = vld [vmem:[#allocation5 + $0xc8] sm:$0xff]  ;;  %421 = vmatprep.subr.mxu1 %v235_v34  ;;  %v102_v39 = vld [vmem:[#allocation5 + $0xc0] sm:$0xff]  ;;  %309 = vmatpush1.msra.mxu0 %v106_v35  ;;  %v112_v34 = vld [vmem:[#allocation5 + $0x110] sm:$0xff] }
  0x3b   :  { %v231_v38 = vld [vmem:[#allocation5 + $0x4c8] sm:$0xff]  ;;  %v230_v40 = vld [vmem:[#allocation5 + $0x4c0] sm:$0xff]  ;;  %422 = vmatpush1.msra.mxu1 %v234_v36  ;;  %310 = vmatprep.subr.mxu0 %v103_v37  ;;  %v109_v36 = vld [vmem:[#allocation5 + $0xf8] sm:$0xff] }
  0x3c   :  { %v99_v41 = vld [vmem:[#allocation5 + $0xa8] sm:$0xff]  ;;  %423 = vmatprep.subr.mxu1 %v231_v38  ;;  %v98_v43 = vld [vmem:[#allocation5 + $0xa0] sm:$0xff]  ;;  %311 = vmatpush1.msra.mxu0 %v102_v39  ;;  %v108_v38 = vld [vmem:[#allocation5 + $0xf0] sm:$0xff] }
  0x3d   :  { %v227_v42 = vld [vmem:[#allocation5 + $0x4a8] sm:$0xff]  ;;  %v226_v44 = vld [vmem:[#allocation5 + $0x4a0] sm:$0xff]  ;;  %424 = vmatpush1.msra.mxu1 %v230_v40  ;;  %312 = vmatprep.subr.mxu0 %v99_v41  ;;  %v105_v40 = vld [vmem:[#allocation5 + $0xd8] sm:$0xff] }
  0x3e   :  { %v95_v45 = vld [vmem:[#allocation5 + $0x88] sm:$0xff]  ;;  %425 = vmatprep.subr.mxu1 %v227_v42  ;;  %v94_v47 = vld [vmem:[#allocation5 + $0x80] sm:$0xff]  ;;  %313 = vmatpush1.msra.mxu0 %v98_v43  ;;  %v104_v42 = vld [vmem:[#allocation5 + $0xd0] sm:$0xff] }
  0x3f   :  { %v223_v46 = vld [vmem:[#allocation5 + $0x488] sm:$0xff]  ;;  %v222_v48 = vld [vmem:[#allocation5 + $0x480] sm:$0xff]  ;;  %426 = vmatpush1.msra.mxu1 %v226_v44  ;;  %314 = vmatprep.subr.mxu0 %v95_v45  ;;  %v101_v44 = vld [vmem:[#allocation5 + $0xb8] sm:$0xff] }
  0x40   :  { %v91_v49 = vld [vmem:[#allocation5 + $0x68] sm:$0xff]  ;;  %427 = vmatprep.subr.mxu1 %v223_v46  ;;  %v90_v51 = vld [vmem:[#allocation5 + $0x60] sm:$0xff]  ;;  %315 = vmatpush1.msra.mxu0 %v94_v47  ;;  %v100_v46 = vld [vmem:[#allocation5 + $0xb0] sm:$0xff] }
  0x41   :  { %v219_v50 = vld [vmem:[#allocation5 + $0x468] sm:$0xff]  ;;  %v218_v52 = vld [vmem:[#allocation5 + $0x460] sm:$0xff]  ;;  %428 = vmatpush1.msra.mxu1 %v222_v48  ;;  %316 = vmatprep.subr.mxu0 %v91_v49  ;;  %v97_v48 = vld [vmem:[#allocation5 + $0x98] sm:$0xff] }
  0x42   :  { %v87_v53 = vld [vmem:[#allocation5 + $0x48] sm:$0xff]  ;;  %429 = vmatprep.subr.mxu1 %v219_v50  ;;  %v86_v55 = vld [vmem:[#allocation5 + $0x40] sm:$0xff]  ;;  %317 = vmatpush1.msra.mxu0 %v90_v51  ;;  %v96_v50 = vld [vmem:[#allocation5 + $0x90] sm:$0xff] }
  0x43   :  { %v215_v54 = vld [vmem:[#allocation5 + $0x448] sm:$0xff]  ;;  %v214_v56 = vld [vmem:[#allocation5 + $0x440] sm:$0xff]  ;;  %430 = vmatpush1.msra.mxu1 %v218_v52  ;;  %318 = vmatprep.subr.mxu0 %v87_v53  ;;  %v93_v52 = vld [vmem:[#allocation5 + $0x78] sm:$0xff] }
  0x44   :  { %v83_v57 = vld [vmem:[#allocation5 + $0x28] sm:$0xff]  ;;  %431 = vmatprep.subr.mxu1 %v215_v54  ;;  %v82_v59 = vld [vmem:[#allocation5 + $0x20] sm:$0xff]  ;;  %319 = vmatpush1.msra.mxu0 %v86_v55  ;;  %v92_v54 = vld [vmem:[#allocation5 + $0x70] sm:$0xff] }
  0x45   :  { %v211_v58 = vld [vmem:[#allocation5 + $0x428] sm:$0xff]  ;;  %v210_v60 = vld [vmem:[#allocation5 + $0x420] sm:$0xff]  ;;  %432 = vmatpush1.msra.mxu1 %v214_v56  ;;  %320 = vmatprep.subr.mxu0 %v83_v57  ;;  %v89_v56 = vld [vmem:[#allocation5 + $0x58] sm:$0xff] }
  0x46   :  { %v79_v61 = vld [vmem:[#allocation5 + $0x8] sm:$0xff]  ;;  %433 = vmatprep.subr.mxu1 %v211_v58  ;;  %v78_v63 = vld [vmem:[#allocation5] sm:$0xff]  ;;  %321 = vmatpush1.msra.mxu0 %v82_v59  ;;  %v88_v58 = vld [vmem:[#allocation5 + $0x50] sm:$0xff] }
  0x47   :  { %v207_v62 = vld [vmem:[#allocation5 + $0x408] sm:$0xff]  ;;  %v206_v1 = vld [vmem:[#allocation5 + $0x400] sm:$0xff]  ;;  %434 = vmatpush1.msra.mxu1 %v210_v60  ;;  %322 = vmatprep.subr.mxu0 %v79_v61  ;;  %v85_v60 = vld [vmem:[#allocation5 + $0x38] sm:$0xff] }
  0x48   :  { %v203_v2 = vld [vmem:[#allocation5 + $0x3e8] sm:$0xff]  ;;  %435 = vmatprep.subr.mxu1 %v207_v62  ;;  %v202_v5 = vld [vmem:[#allocation5 + $0x3e0] sm:$0xff]  ;;  %323 = vmatpush1.msra.mxu0 %v78_v63  ;;  %v84_v62 = vld [vmem:[#allocation5 + $0x30] sm:$0xff] }
  0x49   :  { %436 = vmatpush1.msra.mxu1 %v206_v1  ;;  %v199_v7 = vld [vmem:[#allocation5 + $0x3c8] sm:$0xff]  ;;  %324 = vmatprep.subr.mxu0 %v203_v2  ;;  %v198_v9 = vld [vmem:[#allocation5 + $0x3c0] sm:$0xff]  ;;  %v81_v1 = vld [vmem:[#allocation5 + $0x18] sm:$0xff] }
  0x4a   :  { %470 = vmatmul.mubr.f32.vlgmr.msra.gmra.mxu1 %v931_v3  ;;  %518 = vmatprep.subr.mxu1 %v141_v4  ;;  %v195_v11 = vld [vmem:[#allocation5 + $0x3a8] sm:$0xff]  ;;  %v194_v13 = vld [vmem:[#allocation5 + $0x3a0] sm:$0xff] }
  0x4b   :  { %325 = vmatpush2.msra.mxu0 %v202_v5  ;;  %519 = vmatpush1.msra.mxu1 %v140_v6  ;;  %v191_v15 = vld [vmem:[#allocation5 + $0x388] sm:$0xff]  ;;  %v190_v17 = vld [vmem:[#allocation5 + $0x380] sm:$0xff]  ;;  %v80_v5 = vld [vmem:[#allocation5 + $0x10] sm:$0xff] }
  0x4c   :  { %326 = vmatprep.subr.mxu0 %v199_v7  ;;  %520 = vmatprep.subr.mxu1 %v137_v8  ;;  %v187_v19 = vld [vmem:[#allocation5 + $0x368] sm:$0xff]  ;;  %v186_v21 = vld [vmem:[#allocation5 + $0x360] sm:$0xff]  ;;  %v205_v7 = vld [vmem:[#allocation5 + $0x3f8] sm:$0xff] }
  0x4d   :  { %327 = vmatpush2.msra.mxu0 %v198_v9  ;;  %521 = vmatpush1.msra.mxu1 %v136_v10  ;;  %v183_v23 = vld [vmem:[#allocation5 + $0x348] sm:$0xff]  ;;  %v182_v25 = vld [vmem:[#allocation5 + $0x340] sm:$0xff]  ;;  %v269_v8 = vld [vmem:[#allocation5 + $0x5f8] sm:$0xff] }
  0x4e   :  { %328 = vmatprep.subr.mxu0 %v195_v11  ;;  %522 = vmatprep.subr.mxu1 %v133_v12  ;;  %v179_v27 = vld [vmem:[#allocation5 + $0x328] sm:$0xff]  ;;  %v178_v29 = vld [vmem:[#allocation5 + $0x320] sm:$0xff]  ;;  %v204_v9 = vld [vmem:[#allocation5 + $0x3f0] sm:$0xff] }
  0x4f   :  { %329 = vmatpush2.msra.mxu0 %v194_v13  ;;  %523 = vmatpush1.msra.mxu1 %v132_v14  ;;  %v175_v31 = vld [vmem:[#allocation5 + $0x308] sm:$0xff]  ;;  %v174_v33 = vld [vmem:[#allocation5 + $0x300] sm:$0xff]  ;;  %v268_v10 = vld [vmem:[#allocation5 + $0x5f0] sm:$0xff] }
  0x50   :  { %330 = vmatprep.subr.mxu0 %v191_v15  ;;  %524 = vmatprep.subr.mxu1 %v129_v16  ;;  %v171_v35 = vld [vmem:[#allocation5 + $0x2e8] sm:$0xff]  ;;  %v170_v37 = vld [vmem:[#allocation5 + $0x2e0] sm:$0xff]  ;;  %v201_v12 = vld [vmem:[#allocation5 + $0x3d8] sm:$0xff] }
  0x51   :  { %331 = vmatpush2.msra.mxu0 %v190_v17  ;;  %525 = vmatpush1.msra.mxu1 %v128_v18  ;;  %v167_v39 = vld [vmem:[#allocation5 + $0x2c8] sm:$0xff]  ;;  %v166_v41 = vld [vmem:[#allocation5 + $0x2c0] sm:$0xff]  ;;  %v265_v13 = vld [vmem:[#allocation5 + $0x5d8] sm:$0xff] }
  0x52   :  { %332 = vmatprep.subr.mxu0 %v187_v19  ;;  %526 = vmatprep.subr.mxu1 %v125_v20  ;;  %v163_v43 = vld [vmem:[#allocation5 + $0x2a8] sm:$0xff]  ;;  %v162_v45 = vld [vmem:[#allocation5 + $0x2a0] sm:$0xff]  ;;  %v200_v15 = vld [vmem:[#allocation5 + $0x3d0] sm:$0xff] }
  0x53   :  { %333 = vmatpush2.msra.mxu0 %v186_v21  ;;  %527 = vmatpush1.msra.mxu1 %v124_v22  ;;  %v159_v47 = vld [vmem:[#allocation5 + $0x288] sm:$0xff]  ;;  %v158_v49 = vld [vmem:[#allocation5 + $0x280] sm:$0xff]  ;;  %v264_v16 = vld [vmem:[#allocation5 + $0x5d0] sm:$0xff] }
  0x54   :  { %334 = vmatprep.subr.mxu0 %v183_v23  ;;  %528 = vmatprep.subr.mxu1 %v121_v24  ;;  %v155_v51 = vld [vmem:[#allocation5 + $0x268] sm:$0xff]  ;;  %v154_v53 = vld [vmem:[#allocation5 + $0x260] sm:$0xff]  ;;  %v946_v17 = vld [vmem:[#allocation2 + $0x18] sm:$0xff] }
  0x55   :  { %335 = vmatpush2.msra.mxu0 %v182_v25  ;;  %529 = vmatpush1.msra.mxu1 %v120_v26  ;;  %v151_v55 = vld [vmem:[#allocation5 + $0x248] sm:$0xff]  ;;  %v150_v57 = vld [vmem:[#allocation5 + $0x240] sm:$0xff]  ;;  %v197_v18 = vld [vmem:[#allocation5 + $0x3b8] sm:$0xff] }
  0x56   :  { %336 = vmatprep.subr.mxu0 %v179_v27  ;;  %530 = vmatprep.subr.mxu1 %v117_v28  ;;  %v147_v59 = vld [vmem:[#allocation5 + $0x228] sm:$0xff]  ;;  %v146_v61 = vld [vmem:[#allocation5 + $0x220] sm:$0xff]  ;;  %v261_v19 = vld [vmem:[#allocation5 + $0x5b8] sm:$0xff] }
  0x57   :  { %337 = vmatpush2.msra.mxu0 %v178_v29  ;;  %531 = vmatpush1.msra.mxu1 %v116_v30  ;;  %v143_v63 = vld [vmem:[#allocation5 + $0x208] sm:$0xff]  ;;  %v142_v2 = vld [vmem:[#allocation5 + $0x200] sm:$0xff]  ;;  %v196_v20 = vld [vmem:[#allocation5 + $0x3b0] sm:$0xff] }
  0x58   :  { %338 = vmatprep.subr.mxu0 %v175_v31  ;;  %532 = vmatprep.subr.mxu1 %v113_v32  ;;  %v934_v4 = vld [vmem:[#allocation2 + $0x8] sm:$0xff]  ;;  %v936_v6 = vld [vmem:[#allocation2] sm:$0xff]  ;;  %v260_v21 = vld [vmem:[#allocation5 + $0x5b0] sm:$0xff] }
  0x59   :  { %339 = vmatpush2.msra.mxu0 %v174_v33  ;;  %533 = vmatpush1.msra.mxu1 %v112_v34  ;;  %v940_v11 = vld [vmem:[#allocation2 + $0x28] sm:$0xff]  ;;  %v943_v14 = vld [vmem:[#allocation2 + $0x20] sm:$0xff]  ;;  %v193_v23 = vld [vmem:[#allocation5 + $0x398] sm:$0xff] }
  0x5a   :  { %340 = vmatprep.subr.mxu0 %v171_v35  ;;  %534 = vmatprep.subr.mxu1 %v109_v36  ;;  %v950_v22 = vld [vmem:[#allocation2 + $0x40] sm:$0xff]  ;;  %v257_v24 = vld [vmem:[#allocation5 + $0x598] sm:$0xff]  ;;  %v192_v26 = vld [vmem:[#allocation5 + $0x390] sm:$0xff] }
  0x5b   :  { %341 = vmatpush2.msra.mxu0 %v170_v37  ;;  %535 = vmatpush1.msra.mxu1 %v108_v38  ;;  %v953_v25 = vld [vmem:[#allocation2 + $0x38] sm:$0xff]  ;;  %v256_v27 = vld [vmem:[#allocation5 + $0x590] sm:$0xff] }
  0x5c   :  { %342 = vmatprep.subr.mxu0 %v167_v39  ;;  %536 = vmatprep.subr.mxu1 %v105_v40  ;;  %v956_v28 = vld [vmem:[#allocation2 + $0x30] sm:$0xff]  ;;  %v189_v29 = vld [vmem:[#allocation5 + $0x378] sm:$0xff]  ;;  %v966_v39 = vld [vmem:[#allocation2 + $0x48] sm:$0xff] }
  0x5d   :  { %343 = vmatpush2.msra.mxu0 %v166_v41  ;;  %537 = vmatpush1.msra.mxu1 %v104_v42  ;;  %v253_v30 = vld [vmem:[#allocation5 + $0x578] sm:$0xff]  ;;  %v188_v31 = vld [vmem:[#allocation5 + $0x370] sm:$0xff] }
  0x5e   :  { %344 = vmatprep.subr.mxu0 %v163_v43  ;;  %538 = vmatprep.subr.mxu1 %v101_v44  ;;  %v252_v32 = vld [vmem:[#allocation5 + $0x570] sm:$0xff]  ;;  %v960_v33 = vld [vmem:[#allocation2 + $0x58] sm:$0xff] }
  0x5f   :  { %345 = vmatpush2.msra.mxu0 %v162_v45  ;;  %539 = vmatpush1.msra.mxu1 %v100_v46  ;;  %v185_v34 = vld [vmem:[#allocation5 + $0x358] sm:$0xff]  ;;  %v963_v36 = vld [vmem:[#allocation2 + $0x50] sm:$0xff] }
  0x60   :  { %346 = vmatprep.subr.mxu0 %v159_v47  ;;  %540 = vmatprep.subr.mxu1 %v97_v48  ;;  %v249_v35 = vld [vmem:[#allocation5 + $0x558] sm:$0xff]  ;;  %v184_v37 = vld [vmem:[#allocation5 + $0x350] sm:$0xff]  ;;  %v973_v47 = vld [vmem:[#allocation2 + $0x68] sm:$0xff] }
  0x61   :  { %347 = vmatpush2.msra.mxu0 %v158_v49  ;;  %541 = vmatpush1.msra.mxu1 %v96_v50  ;;  %v248_v38 = vld [vmem:[#allocation5 + $0x550] sm:$0xff]  ;;  %v181_v40 = vld [vmem:[#allocation5 + $0x338] sm:$0xff]  ;;  %v976_v50 = vld [vmem:[#allocation2 + $0x60] sm:$0xff] }
  0x62   :  { %348 = vmatprep.subr.mxu0 %v155_v51  ;;  %542 = vmatprep.subr.mxu1 %v93_v52  ;;  %v245_v41 = vld [vmem:[#allocation5 + $0x538] sm:$0xff]  ;;  %v180_v42 = vld [vmem:[#allocation5 + $0x330] sm:$0xff] }
  0x63   :  { %349 = vmatpush2.msra.mxu0 %v154_v53  ;;  %543 = vmatpush1.msra.mxu1 %v92_v54  ;;  %v244_v43 = vld [vmem:[#allocation5 + $0x530] sm:$0xff]  ;;  %v177_v45 = vld [vmem:[#allocation5 + $0x318] sm:$0xff] }
  0x64   :  { %350 = vmatprep.subr.mxu0 %v151_v55  ;;  %544 = vmatprep.subr.mxu1 %v89_v56  ;;  %v970_v44 = vld [vmem:[#allocation2 + $0x70] sm:$0xff]  ;;  %v241_v46 = vld [vmem:[#allocation5 + $0x518] sm:$0xff]  ;;  %v980_v55 = vld [vmem:[#allocation2 + $0x88] sm:$0xff] }
  0x65   :  { %351 = vmatpush2.msra.mxu0 %v150_v57  ;;  %545 = vmatpush1.msra.mxu1 %v88_v58  ;;  %v176_v48 = vld [vmem:[#allocation5 + $0x310] sm:$0xff]  ;;  %v173_v51 = vld [vmem:[#allocation5 + $0x2f8] sm:$0xff]  ;;  %v983_v58 = vld [vmem:[#allocation2 + $0x80] sm:$0xff] }
  0x66   :  { %352 = vmatprep.subr.mxu0 %v147_v59  ;;  %546 = vmatprep.subr.mxu1 %v85_v60  ;;  %v240_v49 = vld [vmem:[#allocation5 + $0x510] sm:$0xff]  ;;  %v237_v52 = vld [vmem:[#allocation5 + $0x4f8] sm:$0xff] }
  0x67   :  { %353 = vmatpush2.msra.mxu0 %v146_v61  ;;  %547 = vmatpush1.msra.mxu1 %v84_v62  ;;  %v172_v53 = vld [vmem:[#allocation5 + $0x2f0] sm:$0xff]  ;;  %v169_v56 = vld [vmem:[#allocation5 + $0x2d8] sm:$0xff] }
  0x68   :  { %354 = vmatprep.subr.mxu0 %v143_v63  ;;  %548 = vmatprep.subr.mxu1 %v81_v1  ;;  %v236_v54 = vld [vmem:[#allocation5 + $0x4f0] sm:$0xff]  ;;  %v233_v57 = vld [vmem:[#allocation5 + $0x4d8] sm:$0xff] }
  0x69   :  { %355 = vmatpush2.msra.mxu0 %v142_v2  ;;  %356 = vmatprep.mubr.f32.mxu0 %v934_v4  ;;  %v168_v59 = vld [vmem:[#allocation5 + $0x2d0] sm:$0xff]  ;;  %v986_v61 = vld [vmem:[#allocation2 + $0x78] sm:$0xff] }
  0x6a   :  { %549 = vmatpush1.msra.mxu1 %v80_v5  ;;  %357 = vmatmul.mubr.f32.vlgmr.msra.gmra.mxu0 %v936_v6  ;;  %v232_v60 = vld [vmem:[#allocation5 + $0x4d0] sm:$0xff]  ;;  %v165_v62 = vld [vmem:[#allocation5 + $0x2b8] sm:$0xff]  ;;  %v990_v5 = vld [vmem:[#allocation2 + $0xa0] sm:$0xff] }
  0x6b   :  { %550 = vmatprep.subr.mxu1 %v205_v7  ;;  %631 = vmatprep.subr.mxu0 %v269_v8  ;;  %v229_v63 = vld [vmem:[#allocation5 + $0x4b8] sm:$0xff]  ;;  %v164_v1 = vld [vmem:[#allocation5 + $0x2b0] sm:$0xff] }
  0x6c   :  { %475 = vmatprep.mubr.f32.mxu1 %v896_v0  ;;  %551 = vmatpush2.msra.mxu1 %v204_v9  ;;  %v228_v2 = vld [vmem:[#allocation5 + $0x4b0] sm:$0xff]  ;;  %v161_v7 = vld [vmem:[#allocation5 + $0x298] sm:$0xff] }
  0x6d   :  { %632 = vmatpush1.msra.mxu0 %v268_v10  ;;  %476 = vmatmul.mubr.f32.gmra.mxu1 %v940_v11  ;;  %v225_v8 = vld [vmem:[#allocation5 + $0x498] sm:$0xff]  ;;  %v160_v10 = vld [vmem:[#allocation5 + $0x290] sm:$0xff] }
  0x6e   :  { %552 = vmatprep.subr.mxu1 %v201_v12  ;;  %633 = vmatprep.subr.mxu0 %v265_v13  ;;  %v993_v9 = vld [vmem:[#allocation2 + $0x98] sm:$0xff]  ;;  %v224_v12 = vld [vmem:[#allocation5 + $0x490] sm:$0xff] }
  0x6f   :  { %362 = vmatprep.mubr.f32.mxu0 %v943_v14  ;;  %553 = vmatpush2.msra.mxu1 %v200_v15  ;;  %v996_v13 = vld [vmem:[#allocation2 + $0x90] sm:$0xff]  ;;  %v157_v15 = vld [vmem:[#allocation5 + $0x278] sm:$0xff] }
  0x70   :  { %634 = vmatpush1.msra.mxu0 %v264_v16  ;;  %554 = vmatprep.subr.mxu1 %v197_v18  ;;  %v221_v16 = vld [vmem:[#allocation5 + $0x478] sm:$0xff]  ;;  %v156_v18 = vld [vmem:[#allocation5 + $0x270] sm:$0xff] }
  0x71   :  { %363 = vmatmul.mubr.f32.gmra.mxu0 %v946_v17  ;;  %635 = vmatprep.subr.mxu0 %v261_v19  ;;  %v220_v19 = vld [vmem:[#allocation5 + $0x470] sm:$0xff] }
  0x72   :  { %481 = vmatprep.mubr.f32.mxu1 %v896_v0  ;;  %555 = vmatpush2.msra.mxu1 %v196_v20  ;;  %v1000_v20 = vld [vmem:[#allocation2 + $0xb8] sm:$0xff] }
  0x73   :  { %636 = vmatpush1.msra.mxu0 %v260_v21  ;;  %482 = vmatmul.mubr.f32.gmra.mxu1 %v950_v22  ;;  %v153_v21 = vld [vmem:[#allocation5 + $0x258] sm:$0xff] }
  0x74   :  { %556 = vmatprep.subr.mxu1 %v193_v23  ;;  %637 = vmatprep.subr.mxu0 %v257_v24  ;;  %v217_v23 = vld [vmem:[#allocation5 + $0x458] sm:$0xff]  ;;  %v76_v24 = vld [vmem:[#allocation2 + $0xb0] sm:$0xff] }
  0x75   :  { %368 = vmatprep.mubr.f32.mxu0 %v953_v25  ;;  %557 = vmatpush2.msra.mxu1 %v192_v26  ;;  %v152_v26 = vld [vmem:[#allocation5 + $0x250] sm:$0xff] }
  0x76   :  { %638 = vmatpush1.msra.mxu0 %v256_v27  ;;  %558 = vmatprep.subr.mxu1 %v189_v29  ;;  %v216_v27 = vld [vmem:[#allocation5 + $0x450] sm:$0xff]  ;;  %v75_v29 = vld [vmem:[#allocation2 + $0xa8] sm:$0xff] }
  0x77   :  { %369 = vmatmul.mubr.f32.gmra.mxu0 %v956_v28  ;;  %639 = vmatprep.subr.mxu0 %v253_v30  ;;  %v149_v30 = vld [vmem:[#allocation5 + $0x238] sm:$0xff] }
  0x78   :  { %487 = vmatprep.mubr.f32.mxu1 %v896_v0  ;;  %559 = vmatpush2.msra.mxu1 %v188_v31  ;;  %v213_v31 = vld [vmem:[#allocation5 + $0x438] sm:$0xff] }
  0x79   :  { %640 = vmatpush1.msra.mxu0 %v252_v32  ;;  %488 = vmatmul.mubr.f32.gmra.mxu1 %v960_v33  ;;  %v148_v32 = vld [vmem:[#allocation5 + $0x230] sm:$0xff] }
  0x7a   :  { %560 = vmatprep.subr.mxu1 %v185_v34  ;;  %641 = vmatprep.subr.mxu0 %v249_v35  ;;  %v212_v34 = vld [vmem:[#allocation5 + $0x430] sm:$0xff]  ;;  %v145_v35 = vld [vmem:[#allocation5 + $0x218] sm:$0xff] }
  0x7b   :  { %374 = vmatprep.mubr.f32.mxu0 %v963_v36  ;;  %561 = vmatpush2.msra.mxu1 %v184_v37  ;;  %v209_v37 = vld [vmem:[#allocation5 + $0x418] sm:$0xff] }
  0x7c   :  { %642 = vmatpush1.msra.mxu0 %v248_v38  ;;  %562 = vmatprep.subr.mxu1 %v181_v40  ;;  %v144_v38 = vld [vmem:[#allocation5 + $0x210] sm:$0xff] }
  0x7d   :  { %375 = vmatmul.mubr.f32.gmra.mxu0 %v966_v39  ;;  %643 = vmatprep.subr.mxu0 %v245_v41  ;;  %v208_v40 = vld [vmem:[#allocation5 + $0x410] sm:$0xff] }
  0x7e   :  { %493 = vmatprep.mubr.f32.mxu1 %v896_v0  ;;  %563 = vmatpush2.msra.mxu1 %v180_v42 }
  0x7f   :  { %644 = vmatpush1.msra.mxu0 %v244_v43  ;;  %494 = vmatmul.mubr.f32.gmra.mxu1 %v970_v44 }
  0x80   :  { %564 = vmatprep.subr.mxu1 %v177_v45  ;;  %645 = vmatprep.subr.mxu0 %v241_v46 }
  0x81   :  { %380 = vmatprep.mubr.f32.mxu0 %v973_v47  ;;  %565 = vmatpush2.msra.mxu1 %v176_v48 }
  0x82   :  { %646 = vmatpush1.msra.mxu0 %v240_v49  ;;  %566 = vmatprep.subr.mxu1 %v173_v51 }
  0x83   :  { %381 = vmatmul.mubr.f32.gmra.mxu0 %v976_v50  ;;  %647 = vmatprep.subr.mxu0 %v237_v52 }
  0x84   :  { %499 = vmatprep.mubr.f32.mxu1 %v896_v0  ;;  %567 = vmatpush2.msra.mxu1 %v172_v53 }
  0x85   :  { %648 = vmatpush1.msra.mxu0 %v236_v54  ;;  %500 = vmatmul.mubr.f32.gmra.mxu1 %v980_v55 }
  0x86   :  { %568 = vmatprep.subr.mxu1 %v169_v56  ;;  %649 = vmatprep.subr.mxu0 %v233_v57 }
  0x87   :  { %386 = vmatprep.mubr.f32.mxu0 %v983_v58  ;;  %569 = vmatpush2.msra.mxu1 %v168_v59 }
  0x88   :  { %650 = vmatpush1.msra.mxu0 %v232_v60  ;;  %570 = vmatprep.subr.mxu1 %v165_v62 }
  0x89   :  { %387 = vmatmul.mubr.f32.gmra.mxu0 %v986_v61  ;;  %651 = vmatprep.subr.mxu0 %v229_v63 }
  0x8a   :  { %505 = vmatprep.mubr.f32.mxu1 %v896_v0  ;;  %571 = vmatpush2.msra.mxu1 %v164_v1 }
  0x8b   :  { %652 = vmatpush1.msra.mxu0 %v228_v2  ;;  %506 = vmatmul.mubr.f32.gmra.mxu1 %v990_v5 }
  0x8c   :  { %572 = vmatprep.subr.mxu1 %v161_v7  ;;  %653 = vmatprep.subr.mxu0 %v225_v8 }
  0x8d   :  { %392 = vmatprep.mubr.f32.mxu0 %v993_v9  ;;  %573 = vmatpush2.msra.mxu1 %v160_v10 }
  0x8e   :  { %654 = vmatpush1.msra.mxu0 %v224_v12  ;;  %574 = vmatprep.subr.mxu1 %v157_v15 }
  0x8f   :  { %393 = vmatmul.mubr.f32.gmra.mxu0 %v996_v13  ;;  %655 = vmatprep.subr.mxu0 %v221_v16 }
  0x90   :  { %511 = vmatprep.mubr.f32.mxu1 %v896_v0  ;;  %575 = vmatpush2.msra.mxu1 %v156_v18 }
  0x91   :  { %656 = vmatpush1.msra.mxu0 %v220_v19  ;;  %512 = vmatmul.mubr.f32.gmra.mxu1 %v1000_v20 }
  0x92   :  { %576 = vmatprep.subr.mxu1 %v153_v21  ;;  %657 = vmatprep.subr.mxu0 %v217_v23 }
  0x93   :  { %398 = vmatprep.mubr.f32.mxu0 %v76_v24  ;;  %577 = vmatpush2.msra.mxu1 %v152_v26 }
  0x94   :  { %658 = vmatpush1.msra.mxu0 %v216_v27  ;;  %578 = vmatprep.subr.mxu1 %v149_v30 }
  0x95   :  { %399 = vmatmul.mubr.f32.gmra.mxu0 %v75_v29  ;;  %659 = vmatprep.subr.mxu0 %v213_v31 }
  0x96   :  { %579 = vmatpush2.msra.mxu1 %v148_v32  ;;  %660 = vmatpush1.msra.mxu0 %v212_v34 }
  0x97   :  { %580 = vmatprep.subr.mxu1 %v145_v35  ;;  %661 = vmatprep.subr.mxu0 %v209_v37 }
  0x98   :  { %581 = vmatpush2.msra.mxu1 %v144_v38  ;;  %582 = vmatprep.mubr.f32.mxu1 %v934_v4 }
  0x99   :  { %662 = vmatpush1.msra.mxu0 %v208_v40  ;;  %695 = vmatprep.mubr.f32.mxu0 %v896_v0 }
  0x9a   :  { %583 = vmatmul.mubr.f32.vlgmr.msra.gmra.mxu1 %v936_v6  ;;  %696 = vmatmul.mubr.f32.vlgmr.msra.gmra.mxu0 %v931_v3  ;;  %v272_v3 = vlaneseq }
  0x9b   :  { %588 = vmatprep.mubr.f32.mxu1 %v943_v14  ;;  %701 = vmatprep.mubr.f32.mxu0 %v896_v0 }
  0x9c   :  { %v1034_v4 = vshrl.u32 %v272_v3, 7 }
  0x9e   :  { %589 = vmatmul.mubr.f32.gmra.mxu1 %v946_v17  ;;  %702 = vmatmul.mubr.f32.gmra.mxu0 %v940_v11  ;;  %v274_v6 = vsub.s32 0, %v1034_v4  ;;  %v1037_v11 = vld [vmem:[#allocation7] sm:$0xf]  ;;  %v278_v14 = vsub.s32 1, %v1034_v4  ;;  %v282_v38 = vsub.s32 2, %v1034_v4 }
  0x9f   :  { %594 = vmatprep.mubr.f32.mxu1 %v953_v25  ;;  %707 = vmatprep.mubr.f32.mxu0 %v896_v0 }
  0xa0   :  { %v1044_v25 = vrot.slane %v1037_v11, %v278_v14  ;;  %v286_v14 = vsub.s32 3, %v1034_v4 }
  0xa2   :  { %595 = vmatmul.mubr.f32.gmra.mxu1 %v956_v28  ;;  %708 = vmatmul.mubr.f32.gmra.mxu0 %v950_v22  ;;  %v1041_v22 = vrot.slane %v1037_v11, %v274_v6 }
  0xa3   :  { %600 = vmatprep.mubr.f32.mxu1 %v963_v36  ;;  %713 = vmatprep.mubr.f32.mxu0 %v896_v0 }
  0xa6   :  { %601 = vmatmul.mubr.f32.gmra.mxu1 %v966_v39  ;;  %714 = vmatmul.mubr.f32.gmra.mxu0 %v960_v33 }
  0xa7   :  { %606 = vmatprep.mubr.f32.mxu1 %v973_v47  ;;  %719 = vmatprep.mubr.f32.mxu0 %v896_v0 }
  0xaa   :  { %607 = vmatmul.mubr.f32.gmra.mxu1 %v976_v50  ;;  %720 = vmatmul.mubr.f32.gmra.mxu0 %v970_v44 }
  0xab   :  { %612 = vmatprep.mubr.f32.mxu1 %v983_v58  ;;  %725 = vmatprep.mubr.f32.mxu0 %v896_v0 }
  0xae   :  { %613 = vmatmul.mubr.f32.gmra.mxu1 %v986_v61  ;;  %726 = vmatmul.mubr.f32.gmra.mxu0 %v980_v55 }
  0xaf   :  { %618 = vmatprep.mubr.f32.mxu1 %v993_v9  ;;  %731 = vmatprep.mubr.f32.mxu0 %v896_v0 }
  0xb2   :  { %619 = vmatmul.mubr.f32.gmra.mxu1 %v996_v13  ;;  %732 = vmatmul.mubr.f32.gmra.mxu0 %v990_v5 }
  0xb3   :  { %624 = vmatprep.mubr.f32.mxu1 %v76_v24  ;;  %737 = vmatprep.mubr.f32.mxu0 %v896_v0 }
  0xb6   :  { %625 = vmatmul.mubr.f32.gmra.mxu1 %v75_v29  ;;  %738 = vmatmul.mubr.f32.gmra.mxu0 %v1000_v20 }
 0x10a   :  { %v471_v17 = vpop.f32.mrf.mxu1 }
 0x10c   :  { %v473_v28 = vpop.f32.mrf.mxu1 }
 0x12a   :  { %v358_v0 = vpop.f32.mrf.mxu0 }
 0x12b   :  { %v359_v33 = vadd.f32 %v358_v0, %v1041_v22 }
 0x12c   :  { %v360_v36 = vpop.f32.mrf.mxu0 }
 0x12d   :  { %v472_v39 = vadd.f32 %v471_v17, %v359_v33  ;;  %v361_v41 = vadd.f32 %v360_v36, %v1044_v25  ;;  %v477_v42 = vpop.f32.mrf.mxu1 }
 0x12f   :  { %744 = vst [vmem:[#allocation8] sm:$0xff] %v472_v39  ;;  %v474_v43 = vadd.f32 %v473_v28, %v361_v41  ;;  %v479_v44 = vpop.f32.mrf.mxu1  ;;  %v1064_v28 = vrot.slane %v1037_v11, %v282_v38  ;;  %v1068_v41 = vrot.slane %v1037_v11, %v286_v14 }
 0x131   :  { %v364_v45 = vpop.f32.mrf.mxu0  ;;  %745 = vst [vmem:[#allocation8 + $0x8] sm:$0xff] %v474_v43 }
 0x132   :  { %v365_v46 = vadd.f32 %v364_v45, %v1041_v22 }
 0x133   :  { %v366_v47 = vpop.f32.mrf.mxu0  ;;  %v483_v50 = vpop.f32.mrf.mxu1 }
 0x134   :  { %v478_v48 = vadd.f32 %v477_v42, %v365_v46  ;;  %v367_v49 = vadd.f32 %v366_v47, %v1044_v25 }
 0x135   :  { %v485_v52 = vpop.f32.mrf.mxu1 }
 0x136   :  { %748 = vst [vmem:[#allocation8 + $0x20] sm:$0xff] %v478_v48  ;;  %v480_v51 = vadd.f32 %v479_v44, %v367_v49 }
 0x137   :  { %v370_v53 = vpop.f32.mrf.mxu0 }
 0x138   :  { %749 = vst [vmem:[#allocation8 + $0x28] sm:$0xff] %v480_v51  ;;  %v371_v54 = vadd.f32 %v370_v53, %v1041_v22 }
 0x139   :  { %v372_v55 = vpop.f32.mrf.mxu0  ;;  %v489_v58 = vpop.f32.mrf.mxu1 }
 0x13a   :  { %v484_v56 = vadd.f32 %v483_v50, %v371_v54  ;;  %v373_v57 = vadd.f32 %v372_v55, %v1044_v25 }
 0x13b   :  { %v491_v60 = vpop.f32.mrf.mxu1 }
 0x13c   :  { %752 = vst [vmem:[#allocation8 + $0x40] sm:$0xff] %v484_v56  ;;  %v486_v59 = vadd.f32 %v485_v52, %v373_v57 }
 0x13d   :  { %v376_v61 = vpop.f32.mrf.mxu0 }
 0x13e   :  { %753 = vst [vmem:[#allocation8 + $0x48] sm:$0xff] %v486_v59  ;;  %v377_v62 = vadd.f32 %v376_v61, %v1041_v22 }
 0x13f   :  { %v378_v63 = vpop.f32.mrf.mxu0  ;;  %v495_v5 = vpop.f32.mrf.mxu1 }
 0x140   :  { %v490_v1 = vadd.f32 %v489_v58, %v377_v62  ;;  %v379_v2 = vadd.f32 %v378_v63, %v1044_v25 }
 0x141   :  { %v497_v8 = vpop.f32.mrf.mxu1 }
 0x142   :  { %756 = vst [vmem:[#allocation8 + $0x60] sm:$0xff] %v490_v1  ;;  %v492_v7 = vadd.f32 %v491_v60, %v379_v2 }
 0x143   :  { %v382_v9 = vpop.f32.mrf.mxu0 }
 0x144   :  { %757 = vst [vmem:[#allocation8 + $0x68] sm:$0xff] %v492_v7  ;;  %v383_v10 = vadd.f32 %v382_v9, %v1041_v22 }
 0x145   :  { %v384_v12 = vpop.f32.mrf.mxu0  ;;  %v501_v16 = vpop.f32.mrf.mxu1 }
 0x146   :  { %v496_v13 = vadd.f32 %v495_v5, %v383_v10  ;;  %v385_v15 = vadd.f32 %v384_v12, %v1044_v25 }
 0x147   :  { %v503_v19 = vpop.f32.mrf.mxu1 }
 0x148   :  { %760 = vst [vmem:[#allocation8 + $0x80] sm:$0xff] %v496_v13  ;;  %v498_v18 = vadd.f32 %v497_v8, %v385_v15 }
 0x149   :  { %v388_v20 = vpop.f32.mrf.mxu0 }
 0x14a   :  { %761 = vst [vmem:[#allocation8 + $0x88] sm:$0xff] %v498_v18  ;;  %v389_v21 = vadd.f32 %v388_v20, %v1041_v22 }
 0x14b   :  { %v390_v23 = vpop.f32.mrf.mxu0  ;;  %v507_v27 = vpop.f32.mrf.mxu1 }
 0x14c   :  { %v502_v24 = vadd.f32 %v501_v16, %v389_v21  ;;  %v391_v26 = vadd.f32 %v390_v23, %v1044_v25 }
 0x14d   :  { %v509_v32 = vpop.f32.mrf.mxu1 }
 0x14e   :  { %764 = vst [vmem:[#allocation8 + $0xa0] sm:$0xff] %v502_v24  ;;  %v504_v29 = vadd.f32 %v503_v19, %v391_v26 }
 0x14f   :  { %v394_v30 = vpop.f32.mrf.mxu0 }
 0x150   :  { %765 = vst [vmem:[#allocation8 + $0xa8] sm:$0xff] %v504_v29  ;;  %v395_v31 = vadd.f32 %v394_v30, %v1041_v22 }
 0x151   :  { %v396_v34 = vpop.f32.mrf.mxu0  ;;  %v513_v3 = vpop.f32.mrf.mxu1 }
 0x152   :  { %v508_v35 = vadd.f32 %v507_v27, %v395_v31  ;;  %v397_v37 = vadd.f32 %v396_v34, %v1044_v25 }
 0x153   :  { %v515_v36 = vpop.f32.mrf.mxu1 }
 0x154   :  { %768 = vst [vmem:[#allocation8 + $0xc0] sm:$0xff] %v508_v35  ;;  %v510_v40 = vadd.f32 %v509_v32, %v397_v37 }
 0x155   :  { %v400_v6 = vpop.f32.mrf.mxu0 }
 0x156   :  { %769 = vst [vmem:[#allocation8 + $0xc8] sm:$0xff] %v510_v40  ;;  %v401_v17 = vadd.f32 %v400_v6, %v1041_v22 }
 0x157   :  { %v402_v0 = vpop.f32.mrf.mxu0 }
 0x158   :  { %v514_v33 = vadd.f32 %v513_v3, %v401_v17  ;;  %v403_v39 = vadd.f32 %v402_v0, %v1044_v25 }
 0x15a   :  { %772 = vst [vmem:[#allocation8 + $0xe0] sm:$0xff] %v514_v33  ;;  %v516_v42 = vadd.f32 %v515_v36, %v403_v39  ;;  %v584_v43 = vpop.f32.mrf.mxu1  ;;  %v697_v4 = vpop.f32.mrf.mxu0 }
 0x15b   :  { %v585_v44 = vadd.f32 %v584_v43, %v1064_v28 }
 0x15c   :  { %773 = vst [vmem:[#allocation8 + $0xe8] sm:$0xff] %v516_v42  ;;  %v586_v45 = vpop.f32.mrf.mxu1  ;;  %v699_v47 = vpop.f32.mrf.mxu0 }
 0x15d   :  { %v698_v22 = vadd.f32 %v697_v4, %v585_v44  ;;  %v587_v46 = vadd.f32 %v586_v45, %v1068_v41 }
 0x15e   :  { %v590_v48 = vpop.f32.mrf.mxu1  ;;  %v703_v50 = vpop.f32.mrf.mxu0 }
 0x15f   :  { %746 = vst [vmem:[#allocation8 + $0x10] sm:$0xff] %v698_v22  ;;  %v700_v49 = vadd.f32 %v699_v47, %v587_v46  ;;  %v591_v25 = vadd.f32 %v590_v48, %v1064_v28 }
 0x160   :  { %v592_v11 = vpop.f32.mrf.mxu1  ;;  %v705_v53 = vpop.f32.mrf.mxu0 }
 0x161   :  { %747 = vst [vmem:[#allocation8 + $0x18] sm:$0xff] %v700_v49  ;;  %v704_v51 = vadd.f32 %v703_v50, %v591_v25  ;;  %v593_v52 = vadd.f32 %v592_v11, %v1068_v41 }
 0x162   :  { %v596_v54 = vpop.f32.mrf.mxu1  ;;  %v709_v57 = vpop.f32.mrf.mxu0 }
 0x163   :  { %750 = vst [vmem:[#allocation8 + $0x30] sm:$0xff] %v704_v51  ;;  %v706_v55 = vadd.f32 %v705_v53, %v593_v52  ;;  %v597_v56 = vadd.f32 %v596_v54, %v1064_v28 }
 0x164   :  { %v598_v58 = vpop.f32.mrf.mxu1  ;;  %v711_v61 = vpop.f32.mrf.mxu0 }
 0x165   :  { %751 = vst [vmem:[#allocation8 + $0x38] sm:$0xff] %v706_v55  ;;  %v710_v59 = vadd.f32 %v709_v57, %v597_v56  ;;  %v599_v60 = vadd.f32 %v598_v58, %v1068_v41 }
 0x166   :  { %v602_v62 = vpop.f32.mrf.mxu1  ;;  %v715_v2 = vpop.f32.mrf.mxu0 }
 0x167   :  { %754 = vst [vmem:[#allocation8 + $0x50] sm:$0xff] %v710_v59  ;;  %v712_v63 = vadd.f32 %v711_v61, %v599_v60  ;;  %v603_v1 = vadd.f32 %v602_v62, %v1064_v28 }
 0x168   :  { %v604_v5 = vpop.f32.mrf.mxu1  ;;  %v717_v9 = vpop.f32.mrf.mxu0 }
 0x169   :  { %755 = vst [vmem:[#allocation8 + $0x58] sm:$0xff] %v712_v63  ;;  %v716_v7 = vadd.f32 %v715_v2, %v603_v1  ;;  %v605_v8 = vadd.f32 %v604_v5, %v1068_v41 }
 0x16a   :  { %v608_v10 = vpop.f32.mrf.mxu1  ;;  %v721_v15 = vpop.f32.mrf.mxu0 }
 0x16b   :  { %758 = vst [vmem:[#allocation8 + $0x70] sm:$0xff] %v716_v7  ;;  %v718_v12 = vadd.f32 %v717_v9, %v605_v8  ;;  %v609_v13 = vadd.f32 %v608_v10, %v1064_v28 }
 0x16c   :  { %v610_v16 = vpop.f32.mrf.mxu1  ;;  %v723_v20 = vpop.f32.mrf.mxu0 }
 0x16d   :  { %759 = vst [vmem:[#allocation8 + $0x78] sm:$0xff] %v718_v12  ;;  %v722_v18 = vadd.f32 %v721_v15, %v609_v13  ;;  %v611_v19 = vadd.f32 %v610_v16, %v1068_v41 }
 0x16e   :  { %v614_v21 = vpop.f32.mrf.mxu1  ;;  %v727_v26 = vpop.f32.mrf.mxu0 }
 0x16f   :  { %762 = vst [vmem:[#allocation8 + $0x90] sm:$0xff] %v722_v18  ;;  %v724_v23 = vadd.f32 %v723_v20, %v611_v19  ;;  %v615_v24 = vadd.f32 %v614_v21, %v1064_v28 }
 0x170   :  { %v616_v27 = vpop.f32.mrf.mxu1  ;;  %v729_v31 = vpop.f32.mrf.mxu0 }
 0x171   :  { %763 = vst [vmem:[#allocation8 + $0x98] sm:$0xff] %v724_v23  ;;  %v728_v29 = vadd.f32 %v727_v26, %v615_v24  ;;  %v617_v30 = vadd.f32 %v616_v27, %v1068_v41 }
 0x172   :  { %v620_v32 = vpop.f32.mrf.mxu1  ;;  %v733_v37 = vpop.f32.mrf.mxu0 }
 0x173   :  { %766 = vst [vmem:[#allocation8 + $0xb0] sm:$0xff] %v728_v29  ;;  %v730_v34 = vadd.f32 %v729_v31, %v617_v30  ;;  %v621_v35 = vadd.f32 %v620_v32, %v1064_v28 }
 0x174   :  { %v622_v38 = vpop.f32.mrf.mxu1  ;;  %v735_v6 = vpop.f32.mrf.mxu0 }
 0x175   :  { %767 = vst [vmem:[#allocation8 + $0xb8] sm:$0xff] %v730_v34  ;;  %v734_v40 = vadd.f32 %v733_v37, %v621_v35  ;;  %v623_v3 = vadd.f32 %v622_v38, %v1068_v41 }
 0x176   :  { %v626_v14 = vpop.f32.mrf.mxu1  ;;  %v739_v33 = vpop.f32.mrf.mxu0 }
 0x177   :  { %770 = vst [vmem:[#allocation8 + $0xd0] sm:$0xff] %v734_v40  ;;  %v736_v17 = vadd.f32 %v735_v6, %v623_v3  ;;  %v627_v0 = vadd.f32 %v626_v14, %v1064_v28 }
 0x178   :  { %v628_v36 = vpop.f32.mrf.mxu1  ;;  %v741_v43 = vpop.f32.mrf.mxu0 }
 0x179   :  { %771 = vst [vmem:[#allocation8 + $0xd8] sm:$0xff] %v736_v17  ;;  %v740_v39 = vadd.f32 %v739_v33, %v627_v0  ;;  %v629_v42 = vadd.f32 %v628_v36, %v1068_v41 }
 0x17b   :  { %774 = vst [vmem:[#allocation8 + $0xf0] sm:$0xff] %v740_v39  ;;  %v742_v44 = vadd.f32 %v741_v43, %v629_v42 }
 0x17d   :  { %775 = vst [vmem:[#allocation8 + $0xf8] sm:$0xff] %v742_v44 }
 0x17e   :  { %874 = shalt.err (!%p871_p5)
}
 0x17f   :  { %787 = dma.vmem_to_hbm [thread:$0]  %s782_s2, 4096, %s1095_s3, [#allocation4], %s890_s15, %s890_s15, %s891_s16  }
 0x180   :  { %887 = dma.done.wait [#allocation4], 4096  }
 0x181   :  { %888 = vsyncadd [#allocation4], 4294963200 }
 0x182   :  { %791 = vsyncpa [#allocation3], 1 }
 0x183   :  { %792 = vsyncpa [#allocation6], 1 }
 0x184   :  { %793 = vsyncpa [#allocation4], 1 }

</bundles_post_ra>
